<compile_context>
chip_gen: v7x
topology: tpu7x:2x2x1
jax: 0.10.0
libtpu: 0.0.40
codegen_flags: <defaults>
</compile_context>

<pallas_src>
import jax
import jax.numpy as jnp
from jax.experimental import pallas as pl
from jax.experimental.pallas import tpu as pltpu

EPS = 1e-5
LANE = 128                      # TPU lane width
DEFAULT_TILE_B = 2048           # max batch rows per grid step (multiple of 128)
TARGET_GRID_STEPS = 8           # aim for >= this many grid steps when batch allows
VMEM_LIMIT_BYTES = 32 * 1024 * 1024


def _round_up(n, m):
    return ((n + m - 1) // m) * m


# -----------------------------------------------------------------------------
# Kernel: x:[tb, in] f32 -> 3x (bf16 matmul, f32 accum, +bias, ReLU) -> head
# Head output is stored lane-dense as an (8, tb) block (batch along lanes).
# -----------------------------------------------------------------------------
def interaction_predictor_kernel(
    x_ref,
    w1_ref, b1_ref,
    w2_ref, b2_ref,
    w3_ref, b3_ref,
    wo_ref, bo_ref,
    out_ref,
):
    # fc1 (+ folded bn1) + ReLU            (drop1 = identity in eval mode)
    x = x_ref[...].astype(jnp.bfloat16)            # in-kernel cast, no host pad
    h = jnp.dot(x, w1_ref[...], preferred_element_type=jnp.float32)
    h = jnp.maximum(h + b1_ref[...], 0.0)
    # fc2 (+ folded bn2) + ReLU            (drop2 = identity)
    h = jnp.dot(h.astype(jnp.bfloat16), w2_ref[...],
                preferred_element_type=jnp.float32)
    h = jnp.maximum(h + b2_ref[...], 0.0)
    # fc3 (+ folded bn3) + ReLU
    h = jnp.dot(h.astype(jnp.bfloat16), w3_ref[...],
                preferred_element_type=jnp.float32)
    h = jnp.maximum(h + b3_ref[...], 0.0)          # (tb, 64) f32
    # Head (Linear 64 -> 1): contract the 64-dim of both operands (A @ B^T form),
    # giving (8, tb) with the batch tile along lanes -> compact, unmasked store.
    y = jax.lax.dot_general(
        wo_ref[...], h.astype(jnp.bfloat16),
        dimension_numbers=(((1,), (1,)), ((), ())),
        preferred_element_type=jnp.float32)        # (8, tb)
    out_ref[...] = (y + bo_ref[...]).astype(out_ref.dtype)


# -----------------------------------------------------------------------------
# Parameter init matching the PyTorch module's _init_weights:
#   kaiming_normal_(mode='fan_out', nonlinearity='relu') => N(0, sqrt(2/fan_out)),
#   Linear bias = 0; BatchNorm: gamma=1, beta=0, running_mean=0, running_var=1.
# Weights stored as [in, out] (transpose of PyTorch's [out, in]).
# -----------------------------------------------------------------------------
def init_params(key, input_size):
    dims = [(input_size, 256), (256, 128), (128, 64), (64, 1)]
    keys = jax.random.split(key, len(dims))
    params = {}
    for idx, ((fan_in, fan_out), k) in enumerate(zip(dims, keys), start=1):
        std = (2.0 / fan_out) ** 0.5
        params[f"w{idx}"] = std * jax.random.normal(k, (fan_in, fan_out), jnp.float32)
        params[f"b{idx}"] = jnp.zeros((1, fan_out), jnp.float32)
    for idx, width in zip((1, 2, 3), (256, 128, 64)):
        params[f"g{idx}"] = jnp.ones((1, width), jnp.float32)    # gamma
        params[f"be{idx}"] = jnp.zeros((1, width), jnp.float32)  # beta
        params[f"rm{idx}"] = jnp.zeros((1, width), jnp.float32)  # running_mean
        params[f"rv{idx}"] = jnp.ones((1, width), jnp.float32)   # running_var
    return params


def prepare_kernel_params(params):
    """Host-side, done once: fold eval-mode BN into the Linears, build the
    replicated (8, 64) head weight, cast matmul weights to bf16 (biases stay f32).
    API invariant: MUST be re-run whenever weights or BN running stats change."""
    kp = {}
    for i in (1, 2, 3):
        inv = params[f"g{i}"] * jax.lax.rsqrt(params[f"rv{i}"] + EPS)        # (1, out)
        kp[f"w{i}"] = (params[f"w{i}"] * inv).astype(jnp.bfloat16)
        kp[f"b{i}"] = (params[f"b{i}"] - params[f"rm{i}"]) * inv + params[f"be{i}"]
    # Head weight (64, 1) -> (8, 64) row-replicated so the head matmul yields an
    # MXU-friendly (8, tb) lane-dense block; bias stays a (1, 1) f32 scalar.
    kp["wo"] = jnp.tile(params["w4"].T, (8, 1)).astype(jnp.bfloat16)          # (8, 64)
    kp["bo"] = params["b4"].reshape(1, 1).astype(jnp.float32)
    return kp


def interaction_predictor(x, kp, *, tile_b=DEFAULT_TILE_B):
    batch, in_features = x.shape

    # Tile: multiple of 128, capped at tile_b, sized so the grid has ~TARGET_GRID_STEPS
    # steps (keeps both v7x TensorCores busy and amortizes per-step overhead).
    tb = _round_up(pl.cdiv(batch, TARGET_GRID_STEPS), LANE)
    tb = max(LANE, min(tb, _round_up(tile_b, LANE)))
    b_pad = _round_up(batch, tb)
    if b_pad != batch:
        # Cheap batch-row-only zero pad: guarantees no grid step reads undefined rows.
        x = jnp.pad(x, ((0, b_pad - batch), (0, 0)))

    w1, b1 = kp["w1"], kp["b1"]
    w2, b2 = kp["w2"], kp["b2"]
    w3, b3 = kp["w3"], kp["b3"]
    wo, bo = kp["wo"], kp["bo"]

    def resident(a):    # same block every grid step -> stays VMEM-resident
        return pl.BlockSpec(a.shape, lambda i: (0, 0))

    flops = 2 * b_pad * (in_features * 256 + 256 * 128 + 128 * 64 + 8 * 64)
    weight_bytes = sum(int(a.size) * a.dtype.itemsize
                       for a in (w1, b1, w2, b2, w3, b3, wo, bo))
    bytes_accessed = (int(b_pad) * in_features * x.dtype.itemsize   # x read (f32)
                      + 8 * int(b_pad) * 4                          # compact out write
                      + weight_bytes)

    out = pl.pallas_call(
        interaction_predictor_kernel,
        out_shape=jax.ShapeDtypeStruct((8, b_pad), jnp.float32),
        grid=(b_pad // tb,),
        in_specs=[
            pl.BlockSpec((tb, in_features), lambda i: (i, 0)),      # streamed activations
            resident(w1), resident(b1),
            resident(w2), resident(b2),
            resident(w3), resident(b3),
            resident(wo), resident(bo),
        ],
        out_specs=pl.BlockSpec((8, tb), lambda i: (0, i)),          # lane-dense output tile
        compiler_params=pltpu.CompilerParams(
            dimension_semantics=("parallel",),
            vmem_limit_bytes=VMEM_LIMIT_BYTES),
        cost_estimate=pl.CostEstimate(
            flops=flops, transcendentals=0, bytes_accessed=bytes_accessed),
    )(x, w1, b1, w2, b2, w3, b3, wo, bo)

    # Row 0 holds the head output for every batch row (rows are replicas).
    return out[0, :batch].reshape(batch, 1)


# -----------------------------------------------------------------------------
# References for validation
# -----------------------------------------------------------------------------
def reference_forward_folded(x, kp):
    """Pure-JAX reference with the kernel's numerics (bf16 operands, f32 accum)."""
    h = x.astype(jnp.bfloat16)
    for i in (1, 2, 3):
        h = jnp.dot(h, kp[f"w{i}"], preferred_element_type=jnp.float32) + kp[f"b{i}"]
        h = jnp.maximum(h, 0.0).astype(jnp.bfloat16)
    out = jnp.dot(h, kp["wo"][0:1, :].T, preferred_element_type=jnp.float32) + kp["bo"]
    return out                                                   # (batch, 1)


def reference_forward_f32(x, p):
    """Original eval-mode math in f32 (BN unfused) — loose sanity check."""
    h = x
    for i in (1, 2, 3):
        h = jnp.dot(h, p[f"w{i}"]) + p[f"b{i}"]
        h = (h - p[f"rm{i}"]) * jax.lax.rsqrt(p[f"rv{i}"] + EPS) * p[f"g{i}"] + p[f"be{i}"]
        h = jnp.maximum(h, 0.0)
    return jnp.dot(h, p["w4"]) + p["b4"]


if __name__ == "__main__":
    key = jax.random.PRNGKey(0)
    k_params, k_x = jax.random.split(key)

    INPUT_SIZE = 32
    BATCH = 8

    params = init_params(k_params, INPUT_SIZE)
    kparams = prepare_kernel_params(params)
    x = jax.random.normal(k_x, (BATCH, INPUT_SIZE), jnp.float32)

    out = jax.block_until_ready(interaction_predictor(x, kparams))
    assert out.shape == (BATCH, 1), out.shape

    # Exact-numerics check (same bf16/f32 mixed precision as the kernel).
    ref_exact = reference_forward_folded(x, kparams)
    assert jnp.allclose(out, ref_exact, atol=1e-3, rtol=1e-3), \
        "mismatch vs bf16-consistent reference"

    # Loose sanity check against the full-f32, BN-unfused forward.
    ref_f32 = reference_forward_f32(x, params)
    assert jnp.allclose(out, ref_f32, atol=3e-1, rtol=5e-2), \
        "mismatch vs f32 reference beyond bf16 tolerance"

    print("KERNEL_OK")
</pallas_src>

<mosaic_0001>
module attributes {stable_mosaic.version = 11 : i64} {
  func.func @interaction_predictor_kernel(%arg0: i32, %arg1: memref<128x32xf32, #tpu.memory_space<vmem>>, %arg2: memref<32x256xbf16, #tpu.memory_space<vmem>>, %arg3: memref<1x256xf32, #tpu.memory_space<vmem>>, %arg4: memref<256x128xbf16, #tpu.memory_space<vmem>>, %arg5: memref<1x128xf32, #tpu.memory_space<vmem>>, %arg6: memref<128x64xbf16, #tpu.memory_space<vmem>>, %arg7: memref<1x64xf32, #tpu.memory_space<vmem>>, %arg8: memref<8x64xbf16, #tpu.memory_space<vmem>>, %arg9: memref<1x1xf32, #tpu.memory_space<vmem>>, %arg10: memref<8x128xf32, #tpu.memory_space<vmem>>) attributes {dimension_semantics = [#tpu.dimension_semantics<parallel>], iteration_bounds = array<i64: 1>, scalar_prefetch = 0 : i64, scratch_operands = 0 : i64, tpu.core_type = #tpu.core_type<tc>, window_params = [{transform_indices = @transform_0, window_bounds = array<i64: 128, 32>}, {pipeline_mode = #tpu.pipeline_mode<synchronous>, transform_indices = @transform_1, window_bounds = array<i64: 32, 256>}, {pipeline_mode = #tpu.pipeline_mode<synchronous>, transform_indices = @transform_2, window_bounds = array<i64: 1, 256>}, {pipeline_mode = #tpu.pipeline_mode<synchronous>, transform_indices = @transform_3, window_bounds = array<i64: 256, 128>}, {pipeline_mode = #tpu.pipeline_mode<synchronous>, transform_indices = @transform_4, window_bounds = array<i64: 1, 128>}, {pipeline_mode = #tpu.pipeline_mode<synchronous>, transform_indices = @transform_5, window_bounds = array<i64: 128, 64>}, {pipeline_mode = #tpu.pipeline_mode<synchronous>, transform_indices = @transform_6, window_bounds = array<i64: 1, 64>}, {pipeline_mode = #tpu.pipeline_mode<synchronous>, transform_indices = @transform_7, window_bounds = array<i64: 8, 64>}, {pipeline_mode = #tpu.pipeline_mode<synchronous>, transform_indices = @transform_8, window_bounds = array<i64: 1, 1>}, {transform_indices = @transform_9, window_bounds = array<i64: 8, 128>}]} {
    %c0 = arith.constant 0 : index
    %c0_0 = arith.constant 0 : index
    %0 = vector.load %arg1[%c0, %c0_0] : memref<128x32xf32, #tpu.memory_space<vmem>>, vector<128x32xf32>
    %1 = arith.truncf %0 : vector<128x32xf32> to vector<128x32xbf16>
    %c0_1 = arith.constant 0 : index
    %c0_2 = arith.constant 0 : index
    %2 = vector.load %arg2[%c0_1, %c0_2] : memref<32x256xbf16, #tpu.memory_space<vmem>>, vector<32x256xbf16>
    %cst = arith.constant dense<0.000000e+00> : vector<128x256xf32>
    %3 = tpu.matmul %1, %2, %cst {dimension_numbers = #tpu.dot_dimension_numbers<[1], [0], [0], [1], [0, 0, 1, 1], [], []>} : vector<128x32xbf16>, vector<32x256xbf16>, vector<128x256xf32> -> vector<128x256xf32>
    %c0_3 = arith.constant 0 : index
    %c0_4 = arith.constant 0 : index
    %4 = vector.load %arg3[%c0_3, %c0_4] : memref<1x256xf32, #tpu.memory_space<vmem>>, vector<1x256xf32>
    %5 = vector.broadcast %4 : vector<1x256xf32> to vector<128x256xf32>
    %6 = arith.addf %3, %5 : vector<128x256xf32>
    %cst_5 = arith.constant 0.000000e+00 : f32
    %7 = vector.broadcast %cst_5 : f32 to vector<128x256xf32>
    %8 = arith.maximumf %6, %7 : vector<128x256xf32>
    %9 = arith.truncf %8 : vector<128x256xf32> to vector<128x256xbf16>
    %c0_6 = arith.constant 0 : index
    %c0_7 = arith.constant 0 : index
    %10 = vector.load %arg4[%c0_6, %c0_7] : memref<256x128xbf16, #tpu.memory_space<vmem>>, vector<256x128xbf16>
    %cst_8 = arith.constant dense<0.000000e+00> : vector<128x128xf32>
    %11 = tpu.matmul %9, %10, %cst_8 {dimension_numbers = #tpu.dot_dimension_numbers<[1], [0], [0], [1], [0, 0, 1, 1], [], []>} : vector<128x256xbf16>, vector<256x128xbf16>, vector<128x128xf32> -> vector<128x128xf32>
    %c0_9 = arith.constant 0 : index
    %c0_10 = arith.constant 0 : index
    %12 = vector.load %arg5[%c0_9, %c0_10] : memref<1x128xf32, #tpu.memory_space<vmem>>, vector<1x128xf32>
    %13 = vector.broadcast %12 : vector<1x128xf32> to vector<128x128xf32>
    %14 = arith.addf %11, %13 : vector<128x128xf32>
    %cst_11 = arith.constant 0.000000e+00 : f32
    %15 = vector.broadcast %cst_11 : f32 to vector<128x128xf32>
    %16 = arith.maximumf %14, %15 : vector<128x128xf32>
    %17 = arith.truncf %16 : vector<128x128xf32> to vector<128x128xbf16>
    %c0_12 = arith.constant 0 : index
    %c0_13 = arith.constant 0 : index
    %18 = vector.load %arg6[%c0_12, %c0_13] : memref<128x64xbf16, #tpu.memory_space<vmem>>, vector<128x64xbf16>
    %cst_14 = arith.constant dense<0.000000e+00> : vector<128x64xf32>
    %19 = tpu.matmul %17, %18, %cst_14 {dimension_numbers = #tpu.dot_dimension_numbers<[1], [0], [0], [1], [0, 0, 1, 1], [], []>} : vector<128x128xbf16>, vector<128x64xbf16>, vector<128x64xf32> -> vector<128x64xf32>
    %c0_15 = arith.constant 0 : index
    %c0_16 = arith.constant 0 : index
    %20 = vector.load %arg7[%c0_15, %c0_16] : memref<1x64xf32, #tpu.memory_space<vmem>>, vector<1x64xf32>
    %21 = vector.broadcast %20 : vector<1x64xf32> to vector<128x64xf32>
    %22 = arith.addf %19, %21 : vector<128x64xf32>
    %cst_17 = arith.constant 0.000000e+00 : f32
    %23 = vector.broadcast %cst_17 : f32 to vector<128x64xf32>
    %24 = arith.maximumf %22, %23 : vector<128x64xf32>
    %c0_18 = arith.constant 0 : index
    %c0_19 = arith.constant 0 : index
    %25 = vector.load %arg8[%c0_18, %c0_19] : memref<8x64xbf16, #tpu.memory_space<vmem>>, vector<8x64xbf16>
    %26 = arith.truncf %24 : vector<128x64xf32> to vector<128x64xbf16>
    %cst_20 = arith.constant dense<0.000000e+00> : vector<8x128xf32>
    %27 = tpu.matmul %25, %26, %cst_20 {dimension_numbers = #tpu.dot_dimension_numbers<[1], [1], [0], [0], [0, 0, 1, 0], [], []>} : vector<8x64xbf16>, vector<128x64xbf16>, vector<8x128xf32> -> vector<8x128xf32>
    %c0_21 = arith.constant 0 : index
    %c0_22 = arith.constant 0 : index
    %28 = vector.load %arg9[%c0_21, %c0_22] : memref<1x1xf32, #tpu.memory_space<vmem>>, vector<1x1xf32>
    %29 = vector.broadcast %28 : vector<1x1xf32> to vector<8x128xf32>
    %30 = arith.addf %27, %29 : vector<8x128xf32>
    %c0_23 = arith.constant 0 : index
    %c0_24 = arith.constant 0 : index
    %31 = vector.load %arg10[%c0_23, %c0_24] : memref<8x128xf32, #tpu.memory_space<vmem>>, vector<8x128xf32>
    tpu.vector_store %arg10[%c0_23, %c0_24], %30 {strides = array<i32>} : memref<8x128xf32, #tpu.memory_space<vmem>>, vector<8x128xf32>,
    return
  }
  func.func @transform_0(%arg0: i32) -> (i32, i32) {
    %c0_i32 = arith.constant 0 : i32
    %c0_i32_0 = arith.constant 0 : i32
    return %arg0, %c0_i32 : i32, i32
  }
  func.func @transform_1(%arg0: i32) -> (i32, i32) {
    %c0_i32 = arith.constant 0 : i32
    %c0_i32_0 = arith.constant 0 : i32
    %c0_i32_1 = arith.constant 0 : i32
    return %c0_i32, %c0_i32_0 : i32, i32
  }
  func.func @transform_2(%arg0: i32) -> (i32, i32) {
    %c0_i32 = arith.constant 0 : i32
    %c0_i32_0 = arith.constant 0 : i32
    %c0_i32_1 = arith.constant 0 : i32
    return %c0_i32, %c0_i32_0 : i32, i32
  }
  func.func @transform_3(%arg0: i32) -> (i32, i32) {
    %c0_i32 = arith.constant 0 : i32
    %c0_i32_0 = arith.constant 0 : i32
    %c0_i32_1 = arith.constant 0 : i32
    return %c0_i32, %c0_i32_0 : i32, i32
  }
  func.func @transform_4(%arg0: i32) -> (i32, i32) {
    %c0_i32 = arith.constant 0 : i32
    %c0_i32_0 = arith.constant 0 : i32
    %c0_i32_1 = arith.constant 0 : i32
    return %c0_i32, %c0_i32_0 : i32, i32
  }
  func.func @transform_5(%arg0: i32) -> (i32, i32) {
    %c0_i32 = arith.constant 0 : i32
    %c0_i32_0 = arith.constant 0 : i32
    %c0_i32_1 = arith.constant 0 : i32
    return %c0_i32, %c0_i32_0 : i32, i32
  }
  func.func @transform_6(%arg0: i32) -> (i32, i32) {
    %c0_i32 = arith.constant 0 : i32
    %c0_i32_0 = arith.constant 0 : i32
    %c0_i32_1 = arith.constant 0 : i32
    return %c0_i32, %c0_i32_0 : i32, i32
  }
  func.func @transform_7(%arg0: i32) -> (i32, i32) {
    %c0_i32 = arith.constant 0 : i32
    %c0_i32_0 = arith.constant 0 : i32
    %c0_i32_1 = arith.constant 0 : i32
    return %c0_i32, %c0_i32_0 : i32, i32
  }
  func.func @transform_8(%arg0: i32) -> (i32, i32) {
    %c0_i32 = arith.constant 0 : i32
    %c0_i32_0 = arith.constant 0 : i32
    %c0_i32_1 = arith.constant 0 : i32
    return %c0_i32, %c0_i32_0 : i32, i32
  }
  func.func @transform_9(%arg0: i32) -> (i32, i32) {
    %c0_i32 = arith.constant 0 : i32
    %c0_i32_0 = arith.constant 0 : i32
    return %c0_i32, %arg0 : i32, i32
  }
}

</mosaic_0001>

<bundles_post_ra>
// kernel: tpu_custom_call.1
= control target key start
LH: loop header
LB: loop body
LE: loop exit
PB: predicated region body
PF: predicated region fallthrough
CT: control target
= control target key end

     0   :  { %s1384_s0 = inlined_call_operand.vmem [shape: f32[128,32], index: 0, kind: input, shape index: {}]   ;;  %s1385_s1 = inlined_call_operand.vmem [shape: bf16[32,256], index: 1, kind: input, shape index: {}]   ;;  %s1386_s2 = inlined_call_operand.vmem [shape: f32[1,256], index: 2, kind: input, shape index: {}]   ;;  %s1387_s3 = inlined_call_operand.vmem [shape: bf16[256,128], index: 3, kind: input, shape index: {}]   ;;  %s1388_s4 = inlined_call_operand.vmem [shape: f32[1,128], index: 4, kind: input, shape index: {}]   ;;  %s1389_s5 = inlined_call_operand.vmem [shape: bf16[128,64], index: 5, kind: input, shape index: {}]   ;;  %s1390_s6 = inlined_call_operand.vmem [shape: f32[1,64], index: 6, kind: input, shape index: {}]   ;;  %s1391_s7 = inlined_call_operand.vmem [shape: bf16[8,64], index: 7, kind: input, shape index: {}]   ;;  %s1392_s8 = inlined_call_operand.<no memory space> [shape: f32[1,1], index: 8, kind: input, shape index: {}]   ;;  %s1393_s9 = inlined_call_operand.hbm [shape: f32[8,128], index: 9, kind: output, shape index: {}]  }
   0x1   :  { %v14_v0 = vstv %s1392_s8 }
   0x2   :  { %15 = vst [vmem:[#allocation2] sm:$0x1] %v14_v0 }
   0x3   :  { %v1010_v1 = vld [vmem:[%s1385_s1 + $0x4] ss:$8 sps:$4 sm:$0xff]   ;;  %v1012_v2 = vld [vmem:[%s1385_s1] ss:$8 sps:$4 sm:$0xff]   ;;  %v1064_v3 = vmov 0   ;;  %vm96_vm0 = vcmask 261120  }
   0x4   :  { %153 = vmatprep.mubr.bf16.mxu0 %v1064_v3  ;;  %1009 = vset.pattern.permute.xlu0 %v1064_v3  ;;  %v1013_v4 = vld [vmem:[%s1385_s1 + $0x14] ss:$8 sps:$4 sm:$0xff]   ;;  %v1015_v5 = vld [vmem:[%s1385_s1 + $0x10] ss:$8 sps:$4 sm:$0xff]   ;;  %v36_v6 = vld [vmem:[%s1384_s0] sm:$0xff] }
   0x5   :  { %121 = vmatprep.subr.bf16.mxu0 %v1010_v1  ;;  %v37_v7 = vld [vmem:[%s1384_s0 + $0x8] sm:$0xff]  ;;  %v1016_v9 = vld [vmem:[%s1387_s3 + $0x40] sm:$0xff]   ;;  %v38_v10 = vld [vmem:[%s1384_s0 + $0x10] sm:$0xff] }
   0x6   :  { %122 = vmatpush1.bf16.msra.mxu0 %v1012_v2  ;;  %v52_v8 = vpack.c.bf16 %v37_v7, %v36_v6  ;;  %v39_v11 = vld [vmem:[%s1384_s0 + $0x18] sm:$0xff]  ;;  %v1017_v12 = vld [vmem:[%s1387_s3] sm:$0xff]   ;;  %864 = vmatprep.subr.bf16.mxu1 %v1016_v9  ;;  %v1018_v13 = vld [vmem:[%s1387_s3 + $0x48] sm:$0xff]  }
   0x7   :  { %123 = vmatprep.subr.bf16.mxu0 %v1013_v4  ;;  %865 = vmatpush3.bf16.msra.mxu1 %v1017_v12  ;;  %v1019_v14 = vld [vmem:[%s1387_s3 + $0x8] sm:$0xff]   ;;  %v1020_v15 = vld [vmem:[%s1387_s3 + $0x50] sm:$0xff]   ;;  %v53_v16 = vpack.c.bf16 %v39_v11, %v38_v10  ;;  %v1022_v18 = vld [vmem:[%s1387_s3 + $0x58] sm:$0xff]  }
   0x8   :  { %866 = vmatprep.subr.bf16.mxu1 %v1018_v13  ;;  %v1021_v17 = vld [vmem:[%s1387_s3 + $0x10] sm:$0xff]   ;;  %v40_v19 = vld [vmem:[%s1384_s0 + $0x20] sm:$0xff]  ;;  %v41_v20 = vld [vmem:[%s1384_s0 + $0x28] sm:$0xff] }
   0x9   :  { %v1023_v21 = vld [vmem:[%s1387_s3 + $0x18] sm:$0xff]   ;;  %v1024_v22 = vld [vmem:[%s1387_s3 + $0x60] sm:$0xff]   ;;  %v54_v24 = vpack.c.bf16 %v41_v20, %v40_v19  ;;  %v1026_v25 = vld [vmem:[%s1387_s3 + $0x68] sm:$0xff]  }
   0xa   :  { %124 = vmatpush1.bf16.msra.mxu0 %v1015_v5  ;;  %v1025_v23 = vld [vmem:[%s1387_s3 + $0x20] sm:$0xff]   ;;  %v42_v26 = vld [vmem:[%s1384_s0 + $0x30] sm:$0xff]  ;;  %v43_v27 = vld [vmem:[%s1384_s0 + $0x38] sm:$0xff] }
   0xb   :  { %867 = vmatpush3.bf16.msra.mxu1 %v1019_v14 }
   0xc   :  { %868 = vmatprep.subr.bf16.mxu1 %v1020_v15 }
   0xd   :  { %828 = vmatmul.mubr.msk.bf16.vlgmr.msra.gmra.mrb[0].mxu0 %vm96_vm0, %v52_v8 }
   0xe   :  { %163 = vmatprep.mubr.bf16.mxu0 %v1064_v3 }
   0xf   :  { %869 = vmatpush3.bf16.msra.mxu1 %v1021_v17 }
  0x10   :  { %870 = vmatprep.subr.bf16.mxu1 %v1022_v18 }
  0x13   :  { %871 = vmatpush3.bf16.msra.mxu1 %v1023_v21 }
  0x14   :  { %872 = vmatprep.subr.bf16.mxu1 %v1024_v22 }
  0x15   :  { %829 = vmatmul.mubr.msk.bf16.gmra.mrb[4].mxu0 %vm96_vm0, %v53_v16 }
  0x16   :  { %173 = vmatprep.mubr.bf16.mxu0 %v1064_v3 }
  0x17   :  { %873 = vmatpush3.bf16.msra.mxu1 %v1025_v23 }
  0x18   :  { %874 = vmatprep.subr.bf16.mxu1 %v1026_v25 }
  0x1d   :  { %830 = vmatmul.mubr.msk.bf16.gmra.mrb[8].mxu0 %vm96_vm0, %v54_v24 }
  0x1e   :  { %183 = vmatprep.mubr.bf16.mxu0 %v1064_v3 }
  0x1f   :  { %16 = vsyncpa [#allocation4], 0  ;;  %v55_v28 = vpack.c.bf16 %v43_v27, %v42_v26  ;;  %v44_v29 = vld [vmem:[%s1384_s0 + $0x40] sm:$0xff]  ;;  %v45_v30 = vld [vmem:[%s1384_s0 + $0x48] sm:$0xff]  ;;  %v66_v52 = vlaneseq  ;;  %vm1066_vm1 = vmmov 0   ;;  %vm741_vm2 = vcmask 523264  }
  0x20   :  { %v56_v31 = vpack.c.bf16 %v45_v30, %v44_v29  ;;  %v46_v32 = vld [vmem:[%s1384_s0 + $0x50] sm:$0xff]  ;;  %v47_v33 = vld [vmem:[%s1384_s0 + $0x58] sm:$0xff]  ;;  %v48_v35 = vld [vmem:[%s1384_s0 + $0x60] sm:$0xff]  ;;  %s1067_s30 = smov [#allocation3]  }
  0x21   :  { %v57_v34 = vpack.c.bf16 %v47_v33, %v46_v32  ;;  %v49_v36 = vld [vmem:[%s1384_s0 + $0x68] sm:$0xff]  ;;  %v50_v38 = vld [vmem:[%s1384_s0 + $0x70] sm:$0xff]  ;;  %v51_v39 = vld [vmem:[%s1384_s0 + $0x78] sm:$0xff]  ;;  %v67_v53 = vshrl.u32 %v66_v52, 7  ;;  %s816_s10 = sshll.u32 %s1067_s30, 4  ;;  %s817_s10 = int_to_ptr.vmem [resolvable:$true] %s816_s10 }
  0x22   :  { %v58_v37 = vpack.c.bf16 %v49_v36, %v48_v35  ;;  %v59_v40 = vpack.c.bf16 %v51_v39, %v50_v38  ;;  %v1027_v41 = vld [vmem:[%s1387_s3 + $0x28] sm:$0xff]   ;;  %v1028_v42 = vld [vmem:[%s1387_s3 + $0x70] sm:$0xff]   ;;  %v1030_v44 = vld [vmem:[%s1387_s3 + $0x78] sm:$0xff]   ;;  %s1040_s0 = scalar_lea.vmem %s817_s10, 128  ;;  %p1045_p1 = scmp.lt.s32.totalorder %s817_s10, %s817_s10 }
  0x23   :  { %875 = vmatpush3.bf16.msra.mxu1 %v1027_v41  ;;  %v1029_v43 = vld [vmem:[%s1387_s3 + $0x30] sm:$0xff]   ;;  %v1031_v45 = vld [vmem:[%s1387_s3 + $0x38] sm:$0xff]   ;;  %v1032_v46 = vld [vmem:[%s1389_s5] sm:$0xff]   ;;  %v68_v54 = vsub.s32 0, %v67_v53  ;;  %v72_v56 = vsub.s32 1, %v67_v53  ;;  %p1041_p0 = scmp.ne.s32.totalorder %s817_s10, %s1040_s0  ;;  %p1046_p2 = scmp.lt.s32.totalorder %s1040_s0, %s1040_s0 }
  0x24   :  { %876 = vmatprep.subr.bf16.mxu1 %v1028_v42  ;;  %v1033_v47 = vld [vmem:[%s1389_s5 + $0x8] sm:$0xff]   ;;  %953 = vmatprep.subr.bf16.mxu0 %v1032_v46  ;;  %v1034_v48 = vld [vmem:[%s1389_s5 + $0x10] sm:$0xff]   ;;  %v1035_v49 = vld [vmem:[%s1389_s5 + $0x18] sm:$0xff]  }
  0x25   :  { %831 = vmatmul.mubr.msk.bf16.gmra.mrb[12].mxu0 %vm96_vm0, %v55_v28  ;;  %v1036_v50 = vld [vmem:[%s1389_s5 + $0x20] sm:$0xff]   ;;  %v1037_v51 = vld [vmem:[%s1389_s5 + $0x28] sm:$0xff]   ;;  %p1047_p3 = por %p1046_p2, %p1045_p1 }
  0x26   :  { %193 = vmatprep.mubr.bf16.mxu0 %v1064_v3  ;;  %954 = vmatpush3.bf16.msra.mxu0 %v1032_v46  ;;  %v64_v55 = vld [vmem:[%s1386_s2] sm:$0x3] }
  0x27   :  { %877 = vmatpush3.bf16.msra.mxu1 %v1029_v43  ;;  %955 = vmatprep.subr.bf16.mxu0 %v1033_v47  ;;  %v1267_v57 = vrot.slane %v64_v55, %v68_v54  ;;  %v1269_v58 = vrot.slane %v64_v55, %v72_v56  ;;  %p1048_p4 = pnand %p1047_p3, %p1041_p0 }
  0x28   :  { %878 = vmatprep.subr.bf16.mxu1 %v1030_v44 }
  0x2a   :  { %956 = vmatpush3.bf16.msra.mxu0 %v1033_v47 }
  0x2b   :  { %879 = vmatpush3.bf16.msra.mxu1 %v1031_v45  ;;  %957 = vmatprep.subr.bf16.mxu0 %v1034_v48 }
  0x2d   :  { %832 = vmatmul.mubr.msk.bf16.gmra.mrb[16].mxu0 %vm96_vm0, %v56_v31 }
  0x2e   :  { %203 = vmatprep.mubr.bf16.mxu0 %v1064_v3  ;;  %958 = vmatpush3.bf16.msra.mxu0 %v1034_v48 }
  0x2f   :  { %959 = vmatprep.subr.bf16.mxu0 %v1035_v49 }
  0x32   :  { %960 = vmatpush3.bf16.msra.mxu0 %v1035_v49 }
  0x33   :  { %961 = vmatprep.subr.bf16.mxu0 %v1036_v50 }
  0x35   :  { %833 = vmatmul.mubr.msk.bf16.gmra.mrb[20].mxu0 %vm96_vm0, %v57_v34 }
  0x36   :  { %213 = vmatprep.mubr.bf16.mxu0 %v1064_v3  ;;  %962 = vmatpush3.bf16.msra.mxu0 %v1036_v50 }
  0x37   :  { %963 = vmatprep.subr.bf16.mxu0 %v1037_v51 }
  0x3a   :  { %964 = vmatpush3.bf16.msra.mxu0 %v1037_v51 }
  0x3d   :  { %834 = vmatmul.mubr.msk.bf16.gmra.mrb[24].mxu0 %vm96_vm0, %v58_v37 }
  0x3e   :  { %223 = vmatprep.mubr.bf16.mxu0 %v1064_v3 }
  0x45   :  { %835 = vmatmul.mubr.msk.bf16.gmra.mrb[28].mxu0 %vm96_vm0, %v59_v40 }
  0xe0   :  { %v155_v59 = vpop.f32.mrb[0].mxu0 }
  0xe1   :  { %v156_v60 = vadd.f32 %v155_v59, %v1267_v57  ;;  %v157_v61 = vpop.f32.mrb[1].mxu0 }
  0xe2   :  { %v158_v62 = vadd.f32 %v157_v61, %v1269_v58  ;;  %v159_v63 = vpop.f32.mrb[2].mxu0 }
  0xe3   :  { %v160_v0 = vadd.f32 %v159_v63, %v1267_v57  ;;  %v161_v1 = vpop.f32.mrb[3].mxu0  ;;  %v234_v3 = vmax.f32 %v156_v60, 0.0 }
  0xe4   :  { %v162_v2 = vadd.f32 %v161_v1, %v1269_v58  ;;  %v235_v5 = vmax.f32 %v158_v62, 0.0 }
  0xe5   :  { %v236_v4 = vmax.f32 %v160_v0, 0.0 }
  0xe6   :  { %v237_v6 = vmax.f32 %v162_v2, 0.0 }
  0xe7   :  { %v266_v7 = vpack.c.bf16 %v236_v4, %v234_v3 }
  0xe8   :  { %v165_v8 = vpop.f32.mrb[4].mxu0  ;;  %v267_v9 = vpack.c.bf16 %v237_v6, %v235_v5 }
  0xe9   :  { %v166_v10 = vadd.f32 %v165_v8, %v1267_v57  ;;  %v167_v11 = vpop.f32.mrb[5].mxu0 }
  0xea   :  { %v168_v12 = vadd.f32 %v167_v11, %v1269_v58  ;;  %v169_v13 = vpop.f32.mrb[6].mxu0  ;;  %449 = vmatprep.mubr.bf16.mxu1 %v267_v9 }
  0xeb   :  { %v170_v14 = vadd.f32 %v169_v13, %v1267_v57  ;;  %v171_v15 = vpop.f32.mrb[7].mxu0  ;;  %450 = vmatmul.mubr.bf16.vlgmr.msra.gmra.mrb[0].mxu1 %v266_v7  ;;  %v238_v17 = vmax.f32 %v166_v10, 0.0 }
  0xec   :  { %v172_v16 = vadd.f32 %v171_v15, %v1269_v58  ;;  %v239_v19 = vmax.f32 %v168_v12, 0.0 }
  0xed   :  { %v240_v18 = vmax.f32 %v170_v14, 0.0 }
  0xee   :  { %v241_v20 = vmax.f32 %v172_v16, 0.0 }
  0xef   :  { %v268_v21 = vpack.c.bf16 %v240_v18, %v238_v17 }
  0xf0   :  { %v269_v22 = vpack.c.bf16 %v241_v20, %v239_v19  ;;  %v175_v23 = vpop.f32.mrb[8].mxu0 }
  0xf1   :  { %v176_v24 = vadd.f32 %v175_v23, %v1267_v57  ;;  %v177_v25 = vpop.f32.mrb[9].mxu0 }
  0xf2   :  { %v178_v26 = vadd.f32 %v177_v25, %v1269_v58  ;;  %v179_v27 = vpop.f32.mrb[10].mxu0  ;;  %457 = vmatprep.mubr.bf16.mxu1 %v269_v22 }
  0xf3   :  { %v180_v28 = vadd.f32 %v179_v27, %v1267_v57  ;;  %v181_v29 = vpop.f32.mrb[11].mxu0  ;;  %458 = vmatmul.mubr.bf16.gmra.mrb[4].mxu1 %v268_v21  ;;  %v242_v31 = vmax.f32 %v176_v24, 0.0 }
  0xf4   :  { %v182_v30 = vadd.f32 %v181_v29, %v1269_v58  ;;  %v243_v33 = vmax.f32 %v178_v26, 0.0 }
  0xf5   :  { %v244_v32 = vmax.f32 %v180_v28, 0.0 }
  0xf6   :  { %v245_v34 = vmax.f32 %v182_v30, 0.0 }
  0xf7   :  { %v270_v35 = vpack.c.bf16 %v244_v32, %v242_v31 }
  0xf8   :  { %v271_v36 = vpack.c.bf16 %v245_v34, %v243_v33  ;;  %v185_v37 = vpop.f32.mrb[12].mxu0 }
  0xf9   :  { %v186_v38 = vadd.f32 %v185_v37, %v1267_v57  ;;  %v187_v39 = vpop.f32.mrb[13].mxu0 }
  0xfa   :  { %v188_v40 = vadd.f32 %v187_v39, %v1269_v58  ;;  %v189_v41 = vpop.f32.mrb[14].mxu0  ;;  %465 = vmatprep.mubr.bf16.mxu1 %v271_v36 }
  0xfb   :  { %v190_v42 = vadd.f32 %v189_v41, %v1267_v57  ;;  %v191_v43 = vpop.f32.mrb[15].mxu0  ;;  %466 = vmatmul.mubr.bf16.gmra.mrb[8].mxu1 %v270_v35  ;;  %v246_v45 = vmax.f32 %v186_v38, 0.0 }
  0xfc   :  { %v192_v44 = vadd.f32 %v191_v43, %v1269_v58  ;;  %v247_v47 = vmax.f32 %v188_v40, 0.0 }
  0xfd   :  { %v248_v46 = vmax.f32 %v190_v42, 0.0 }
  0xfe   :  { %v249_v48 = vmax.f32 %v192_v44, 0.0 }
  0xff   :  { %v272_v49 = vpack.c.bf16 %v248_v46, %v246_v45  ;;  %v1038_v45 = vld [vmem:[%s1389_s5 + $0x30] sm:$0xff]   ;;  %v1312_v46 = vld [vmem:[%s1388_s4] ss:$0 sm:$0xff] }
 0x100   :  { %v273_v50 = vpack.c.bf16 %v249_v48, %v247_v47  ;;  %v195_v51 = vpop.f32.mrb[16].mxu0  ;;  %965 = vmatprep.subr.bf16.mxu0 %v1038_v45 }
 0x101   :  { %v196_v52 = vadd.f32 %v195_v51, %v1267_v57  ;;  %v197_v53 = vpop.f32.mrb[17].mxu0  ;;  %966 = vmatpush3.bf16.msra.mxu0 %v1038_v45 }
 0x102   :  { %v198_v54 = vadd.f32 %v197_v53, %v1269_v58  ;;  %v199_v55 = vpop.f32.mrb[18].mxu0  ;;  %473 = vmatprep.mubr.bf16.mxu1 %v273_v50 }
 0x103   :  { %v200_v56 = vadd.f32 %v199_v55, %v1267_v57  ;;  %v201_v59 = vpop.f32.mrb[19].mxu0  ;;  %474 = vmatmul.mubr.bf16.gmra.mrb[12].mxu1 %v272_v49  ;;  %v250_v61 = vmax.f32 %v196_v52, 0.0 }
 0x104   :  { %v202_v60 = vadd.f32 %v201_v59, %v1269_v58  ;;  %v251_v63 = vmax.f32 %v198_v54, 0.0 }
 0x105   :  { %v252_v62 = vmax.f32 %v200_v56, 0.0 }
 0x106   :  { %v253_v0 = vmax.f32 %v202_v60, 0.0 }
 0x107   :  { %v274_v1 = vpack.c.bf16 %v252_v62, %v250_v61 }
 0x108   :  { %v275_v2 = vpack.c.bf16 %v253_v0, %v251_v63  ;;  %v205_v3 = vpop.f32.mrb[20].mxu0 }
 0x109   :  { %v206_v4 = vadd.f32 %v205_v3, %v1267_v57  ;;  %v207_v5 = vpop.f32.mrb[21].mxu0 }
 0x10a   :  { %v208_v6 = vadd.f32 %v207_v5, %v1269_v58  ;;  %v209_v7 = vpop.f32.mrb[22].mxu0  ;;  %481 = vmatprep.mubr.bf16.mxu1 %v275_v2 }
 0x10b   :  { %v210_v8 = vadd.f32 %v209_v7, %v1267_v57  ;;  %v211_v9 = vpop.f32.mrb[23].mxu0  ;;  %482 = vmatmul.mubr.bf16.gmra.mrb[16].mxu1 %v274_v1  ;;  %v254_v11 = vmax.f32 %v206_v4, 0.0 }
 0x10c   :  { %v212_v10 = vadd.f32 %v211_v9, %v1269_v58  ;;  %v255_v13 = vmax.f32 %v208_v6, 0.0 }
 0x10d   :  { %v256_v12 = vmax.f32 %v210_v8, 0.0 }
 0x10e   :  { %v257_v14 = vmax.f32 %v212_v10, 0.0 }
 0x10f   :  { %v276_v15 = vpack.c.bf16 %v256_v12, %v254_v11 }
 0x110   :  { %v277_v16 = vpack.c.bf16 %v257_v14, %v255_v13  ;;  %v215_v17 = vpop.f32.mrb[24].mxu0 }
 0x111   :  { %v216_v18 = vadd.f32 %v215_v17, %v1267_v57  ;;  %v217_v19 = vpop.f32.mrb[25].mxu0 }
 0x112   :  { %v218_v20 = vadd.f32 %v217_v19, %v1269_v58  ;;  %v219_v21 = vpop.f32.mrb[26].mxu0  ;;  %489 = vmatprep.mubr.bf16.mxu1 %v277_v16 }
 0x113   :  { %v220_v22 = vadd.f32 %v219_v21, %v1267_v57  ;;  %v221_v23 = vpop.f32.mrb[27].mxu0  ;;  %490 = vmatmul.mubr.bf16.gmra.mrb[20].mxu1 %v276_v15  ;;  %v258_v25 = vmax.f32 %v216_v18, 0.0 }
 0x114   :  { %v222_v24 = vadd.f32 %v221_v23, %v1269_v58  ;;  %v259_v27 = vmax.f32 %v218_v20, 0.0 }
 0x115   :  { %v260_v26 = vmax.f32 %v220_v22, 0.0 }
 0x116   :  { %v261_v28 = vmax.f32 %v222_v24, 0.0 }
 0x117   :  { %v278_v29 = vpack.c.bf16 %v260_v26, %v258_v25 }
 0x118   :  { %v279_v30 = vpack.c.bf16 %v261_v28, %v259_v27  ;;  %v225_v31 = vpop.f32.mrb[28].mxu0 }
 0x119   :  { %v226_v32 = vadd.f32 %v225_v31, %v1267_v57  ;;  %v227_v33 = vpop.f32.mrb[29].mxu0 }
 0x11a   :  { %v228_v34 = vadd.f32 %v227_v33, %v1269_v58  ;;  %v229_v35 = vpop.f32.mrb[30].mxu0  ;;  %497 = vmatprep.mubr.bf16.mxu1 %v279_v30 }
 0x11b   :  { %v230_v36 = vadd.f32 %v229_v35, %v1267_v57  ;;  %v231_v37 = vpop.f32.mrb[31].mxu0  ;;  %498 = vmatmul.mubr.bf16.gmra.mrb[24].mxu1 %v278_v29  ;;  %v262_v39 = vmax.f32 %v226_v32, 0.0  ;;  %v1039_v57 = vld [vmem:[%s1389_s5 + $0x38] sm:$0xff]  }
 0x11c   :  { %v232_v38 = vadd.f32 %v231_v37, %v1269_v58  ;;  %v263_v41 = vmax.f32 %v228_v34, 0.0  ;;  %967 = vmatprep.subr.bf16.mxu0 %v1039_v57 }
 0x11d   :  { %v264_v40 = vmax.f32 %v230_v36, 0.0  ;;  %968 = vmatpush3.bf16.msra.mxu0 %v1039_v57 }
 0x11e   :  { %v265_v42 = vmax.f32 %v232_v38, 0.0 }
 0x11f   :  { %v280_v43 = vpack.c.bf16 %v264_v40, %v262_v39 }
 0x120   :  { %v281_v44 = vpack.c.bf16 %v265_v42, %v263_v41 }
 0x122   :  { %505 = vmatprep.mubr.bf16.mxu1 %v281_v44 }
 0x123   :  { %506 = vmatmul.mubr.bf16.gmra.mrb[28].mxu1 %v280_v43 }
 0x1be   :  { %v880_v58 = vpop.f32.mrb[0].mxu1 }
 0x1bf   :  { %v881_v47 = vpop.f32.mrb[1].mxu1 }
 0x1c0   :  { %v882_v48 = vadd.f32 %v881_v47, %v880_v58  ;;  %v883_v49 = vpop.f32.mrb[2].mxu1 }
 0x1c1   :  { %v884_v50 = vpop.f32.mrb[3].mxu1 }
 0x1c2   :  { %v452_v51 = vadd.f32 %v882_v48, %v1312_v46  ;;  %v885_v52 = vadd.f32 %v884_v50, %v883_v49 }
 0x1c4   :  { %v455_v53 = vadd.f32 %v885_v52, %v1312_v46  ;;  %v514_v54 = vmax.f32 %v452_v51, 0.0 }
 0x1c6   :  { %v515_v55 = vmax.f32 %v455_v53, 0.0  ;;  %v886_v56 = vpop.f32.mrb[4].mxu1 }
 0x1c7   :  { %v887_v59 = vpop.f32.mrb[5].mxu1 }
 0x1c8   :  { %v888_v60 = vadd.f32 %v887_v59, %v886_v56  ;;  %v889_v61 = vpop.f32.mrb[6].mxu1  ;;  %v530_v62 = vpack.c.bf16 %v515_v55, %v514_v54 }
 0x1c9   :  { %v890_v63 = vpop.f32.mrb[7].mxu1 }
 0x1ca   :  { %v460_v0 = vadd.f32 %v888_v60, %v1312_v46  ;;  %v891_v1 = vadd.f32 %v890_v63, %v889_v61  ;;  %969 = vmatprep.mubr.bf16.mxu0 %v530_v62 }
 0x1cc   :  { %v463_v2 = vadd.f32 %v891_v1, %v1312_v46  ;;  %v516_v3 = vmax.f32 %v460_v0, 0.0 }
 0x1ce   :  { %v517_v4 = vmax.f32 %v463_v2, 0.0  ;;  %v892_v5 = vpop.f32.mrb[8].mxu1 }
 0x1cf   :  { %v893_v6 = vpop.f32.mrb[9].mxu1 }
 0x1d0   :  { %v531_v7 = vpack.c.bf16 %v517_v4, %v516_v3  ;;  %v894_v8 = vadd.f32 %v893_v6, %v892_v5  ;;  %v895_v9 = vpop.f32.mrb[10].mxu1 }
 0x1d1   :  { %v896_v10 = vpop.f32.mrb[11].mxu1 }
 0x1d2   :  { %v468_v11 = vadd.f32 %v894_v8, %v1312_v46  ;;  %v897_v12 = vadd.f32 %v896_v10, %v895_v9  ;;  %970 = vmatmul.mubr.bf16.vlgmr.msra.gmra.mrb[32].mxu0 %v531_v7  ;;  %v1065_v9 = vmov 0.0   ;;  %v862_v10 = vld [vmem:[#allocation2] ss:$0 sm:$0xff] }
 0x1d3   :  { %985 = vmatprep.subr.bf16.mxu1 %v1065_v9  ;;  %1001 = vmatprep.mubr.msk.bf16.mxu1 %vm1066_vm1, %v1065_v9 }
 0x1d4   :  { %v471_v13 = vadd.f32 %v897_v12, %v1312_v46  ;;  %v518_v14 = vmax.f32 %v468_v11, 0.0  ;;  %738 = vperm.xlu0 %1009, %v862_v10   ;;  %v1335_v11 = vld [vmem:[%s1390_s6] ss:$0 sm:$0xff] }
 0x1d6   :  { %v519_v15 = vmax.f32 %v471_v13, 0.0  ;;  %v898_v16 = vpop.f32.mrb[12].mxu1 }
 0x1d7   :  { %v899_v17 = vpop.f32.mrb[13].mxu1 }
 0x1d8   :  { %v900_v18 = vadd.f32 %v899_v17, %v898_v16  ;;  %v901_v19 = vpop.f32.mrb[14].mxu1  ;;  %v532_v20 = vpack.c.bf16 %v519_v15, %v518_v14 }
 0x1d9   :  { %v902_v21 = vpop.f32.mrb[15].mxu1 }
 0x1da   :  { %v476_v22 = vadd.f32 %v900_v18, %v1312_v46  ;;  %v903_v23 = vadd.f32 %v902_v21, %v901_v19  ;;  %973 = vmatprep.mubr.bf16.mxu0 %v532_v20 }
 0x1dc   :  { %v479_v24 = vadd.f32 %v903_v23, %v1312_v46  ;;  %v520_v25 = vmax.f32 %v476_v22, 0.0 }
 0x1de   :  { %v521_v26 = vmax.f32 %v479_v24, 0.0  ;;  %v904_v27 = vpop.f32.mrb[16].mxu1 }
 0x1df   :  { %v905_v28 = vpop.f32.mrb[17].mxu1 }
 0x1e0   :  { %v906_v29 = vadd.f32 %v905_v28, %v904_v27  ;;  %v907_v30 = vpop.f32.mrb[18].mxu1  ;;  %v533_v31 = vpack.c.bf16 %v521_v26, %v520_v25 }
 0x1e1   :  { %v908_v32 = vpop.f32.mrb[19].mxu1 }
 0x1e2   :  { %v484_v33 = vadd.f32 %v906_v29, %v1312_v46  ;;  %v909_v34 = vadd.f32 %v908_v32, %v907_v30  ;;  %974 = vmatmul.mubr.bf16.gmra.mrb[36].mxu0 %v533_v31 }
 0x1e4   :  { %v487_v35 = vadd.f32 %v909_v34, %v1312_v46  ;;  %v522_v36 = vmax.f32 %v484_v33, 0.0 }
 0x1e6   :  { %v523_v37 = vmax.f32 %v487_v35, 0.0  ;;  %v910_v38 = vpop.f32.mrb[20].mxu1 }
 0x1e7   :  { %v911_v39 = vpop.f32.mrb[21].mxu1 }
 0x1e8   :  { %v912_v40 = vadd.f32 %v911_v39, %v910_v38  ;;  %v913_v41 = vpop.f32.mrb[22].mxu1  ;;  %v534_v42 = vpack.c.bf16 %v523_v37, %v522_v36 }
 0x1e9   :  { %v914_v43 = vpop.f32.mrb[23].mxu1 }
 0x1ea   :  { %v492_v44 = vadd.f32 %v912_v40, %v1312_v46  ;;  %v915_v45 = vadd.f32 %v914_v43, %v913_v41  ;;  %977 = vmatprep.mubr.bf16.mxu0 %v534_v42 }
 0x1ec   :  { %v495_v57 = vadd.f32 %v915_v45, %v1312_v46  ;;  %v524_v58 = vmax.f32 %v492_v44, 0.0 }
 0x1ee   :  { %v525_v47 = vmax.f32 %v495_v57, 0.0  ;;  %v916_v48 = vpop.f32.mrb[24].mxu1 }
 0x1ef   :  { %v917_v49 = vpop.f32.mrb[25].mxu1 }
 0x1f0   :  { %v918_v50 = vadd.f32 %v917_v49, %v916_v48  ;;  %v919_v51 = vpop.f32.mrb[26].mxu1  ;;  %v535_v52 = vpack.c.bf16 %v525_v47, %v524_v58 }
 0x1f1   :  { %v920_v53 = vpop.f32.mrb[27].mxu1 }
 0x1f2   :  { %v500_v54 = vadd.f32 %v918_v50, %v1312_v46  ;;  %v921_v55 = vadd.f32 %v920_v53, %v919_v51  ;;  %978 = vmatmul.mubr.bf16.gmra.mrb[40].mxu0 %v535_v52 }
 0x1f4   :  { %v503_v56 = vadd.f32 %v921_v55, %v1312_v46  ;;  %v526_v59 = vmax.f32 %v500_v54, 0.0 }
 0x1f6   :  { %v527_v60 = vmax.f32 %v503_v56, 0.0  ;;  %v922_v61 = vpop.f32.mrb[28].mxu1 }
 0x1f7   :  { %v923_v62 = vpop.f32.mrb[29].mxu1 }
 0x1f8   :  { %v924_v63 = vadd.f32 %v923_v62, %v922_v61  ;;  %v925_v0 = vpop.f32.mrb[30].mxu1  ;;  %v536_v1 = vpack.c.bf16 %v527_v60, %v526_v59 }
 0x1f9   :  { %v926_v2 = vpop.f32.mrb[31].mxu1 }
 0x1fa   :  { %v508_v3 = vadd.f32 %v924_v63, %v1312_v46  ;;  %v927_v4 = vadd.f32 %v926_v2, %v925_v0  ;;  %981 = vmatprep.mubr.bf16.mxu0 %v536_v1 }
 0x1fc   :  { %v511_v5 = vadd.f32 %v927_v4, %v1312_v46  ;;  %v528_v6 = vmax.f32 %v508_v3, 0.0 }
 0x1fe   :  { %v529_v7 = vmax.f32 %v511_v5, 0.0 }
 0x200   :  { %v537_v8 = vpack.c.bf16 %v529_v7, %v528_v6 }
 0x202   :  { %982 = vmatmul.mubr.bf16.gmra.mrb[44].mxu0 %v537_v8 }
 0x2a5   :  { %v971_v12 = vpop.f32.mrb[32].mxu0 }
 0x2a6   :  { %v652_v46 = vadd.f32 %v971_v12, %v1335_v11  ;;  %v643_v13 = vpop.f32.mrb[33].mxu0 }
 0x2a7   :  { %v644_v14 = vadd.f32 %v1335_v11, %v643_v13  ;;  %v972_v15 = vpop.f32.mrb[34].mxu0  ;;  %v739_v13 = vpop.permute.xlu0 %738 }
 0x2a8   :  { %v655_v16 = vadd.f32 %v972_v15, %v1335_v11  ;;  %v646_v17 = vpop.f32.mrb[35].mxu0  ;;  %v708_v19 = vmax.f32 %v652_v46, 0.0 }
 0x2a9   :  { %v647_v18 = vadd.f32 %v1335_v11, %v646_v17  ;;  %v706_v21 = vmax.f32 %v644_v14, 0.0 }
 0x2aa   :  { %v709_v20 = vmax.f32 %v655_v16, 0.0 }
 0x2ab   :  { %v707_v22 = vmax.f32 %v647_v18, 0.0 }
 0x2ac   :  { %v724_v23 = vpack.c.bf16 %v709_v20, %v708_v19 }
 0x2ad   :  { %v723_v24 = vpack.c.bf16 %v707_v22, %v706_v21 }
 0x2ae   :  { %v749_v31 = vsel %vm741_vm2, %v724_v23, 0 }
 0x2af   :  { %v746_v25 = vsel %vm741_vm2, %v723_v24, 0 }
 0x2b0   :  { %986 = vmatpush3.bf16.xpose.msra.mxu1 %v746_v25 }
 0x2b1   :  { %987 = vmatprep.subr.bf16.mxu1 %v1065_v9 }
 0x2b5   :  { %v975_v26 = vpop.f32.mrb[36].mxu0 }
 0x2b6   :  { %v668_v27 = vadd.f32 %v975_v26, %v1335_v11  ;;  %v659_v28 = vpop.f32.mrb[37].mxu0 }
 0x2b7   :  { %v660_v29 = vadd.f32 %v1335_v11, %v659_v28  ;;  %v976_v30 = vpop.f32.mrb[38].mxu0 }
 0x2b8   :  { %v671_v32 = vadd.f32 %v976_v30, %v1335_v11  ;;  %v662_v33 = vpop.f32.mrb[39].mxu0  ;;  %988 = vmatpush3.bf16.xpose.msra.mxu1 %v749_v31  ;;  %v712_v35 = vmax.f32 %v668_v27, 0.0 }
 0x2b9   :  { %v663_v34 = vadd.f32 %v1335_v11, %v662_v33  ;;  %989 = vmatprep.subr.bf16.mxu1 %v1065_v9  ;;  %v710_v37 = vmax.f32 %v660_v29, 0.0 }
 0x2ba   :  { %v713_v36 = vmax.f32 %v671_v32, 0.0 }
 0x2bb   :  { %v711_v38 = vmax.f32 %v663_v34, 0.0 }
 0x2bc   :  { %v726_v39 = vpack.c.bf16 %v713_v36, %v712_v35 }
 0x2bd   :  { %v725_v40 = vpack.c.bf16 %v711_v38, %v710_v37 }
 0x2be   :  { %v755_v58 = vsel %vm741_vm2, %v726_v39, 0 }
 0x2bf   :  { %v752_v41 = vsel %vm741_vm2, %v725_v40, 0 }
 0x2c0   :  { %990 = vmatpush3.bf16.xpose.msra.mxu1 %v752_v41 }
 0x2c1   :  { %991 = vmatprep.subr.bf16.mxu1 %v1065_v9 }
 0x2c5   :  { %v979_v42 = vpop.f32.mrb[40].mxu0 }
 0x2c6   :  { %v684_v43 = vadd.f32 %v979_v42, %v1335_v11  ;;  %v675_v44 = vpop.f32.mrb[41].mxu0 }
 0x2c7   :  { %v676_v45 = vadd.f32 %v1335_v11, %v675_v44  ;;  %v980_v57 = vpop.f32.mrb[42].mxu0 }
 0x2c8   :  { %v687_v47 = vadd.f32 %v980_v57, %v1335_v11  ;;  %v678_v48 = vpop.f32.mrb[43].mxu0  ;;  %992 = vmatpush3.bf16.xpose.msra.mxu1 %v755_v58  ;;  %v716_v50 = vmax.f32 %v684_v43, 0.0 }
 0x2c9   :  { %v679_v49 = vadd.f32 %v1335_v11, %v678_v48  ;;  %993 = vmatprep.subr.bf16.mxu1 %v1065_v9  ;;  %v714_v52 = vmax.f32 %v676_v45, 0.0 }
 0x2ca   :  { %v717_v51 = vmax.f32 %v687_v47, 0.0 }
 0x2cb   :  { %v715_v53 = vmax.f32 %v679_v49, 0.0 }
 0x2cc   :  { %v728_v54 = vpack.c.bf16 %v717_v51, %v716_v50 }
 0x2cd   :  { %v727_v55 = vpack.c.bf16 %v715_v53, %v714_v52 }
 0x2ce   :  { %v761_v0 = vsel %vm741_vm2, %v728_v54, 0 }
 0x2cf   :  { %v758_v56 = vsel %vm741_vm2, %v727_v55, 0 }
 0x2d0   :  { %994 = vmatpush3.bf16.xpose.msra.mxu1 %v758_v56 }
 0x2d1   :  { %995 = vmatprep.subr.bf16.mxu1 %v1065_v9 }
 0x2d5   :  { %v983_v59 = vpop.f32.mrb[44].mxu0 }
 0x2d6   :  { %v700_v60 = vadd.f32 %v983_v59, %v1335_v11  ;;  %v691_v61 = vpop.f32.mrb[45].mxu0 }
 0x2d7   :  { %v692_v62 = vadd.f32 %v1335_v11, %v691_v61  ;;  %v984_v63 = vpop.f32.mrb[46].mxu0 }
 0x2d8   :  { %v703_v1 = vadd.f32 %v984_v63, %v1335_v11  ;;  %v694_v2 = vpop.f32.mrb[47].mxu0  ;;  %996 = vmatpush3.bf16.xpose.msra.mxu1 %v761_v0  ;;  %v720_v4 = vmax.f32 %v700_v60, 0.0 }
 0x2d9   :  { %v695_v3 = vadd.f32 %v1335_v11, %v694_v2  ;;  %997 = vmatprep.subr.bf16.mxu1 %v1065_v9  ;;  %v718_v6 = vmax.f32 %v692_v62, 0.0  ;;  %v722_v11 = vld [vmem:[%s1391_s7] sm:$0xf] }
 0x2da   :  { %v721_v5 = vmax.f32 %v703_v1, 0.0 }
 0x2db   :  { %v719_v7 = vmax.f32 %v695_v3, 0.0 }
 0x2dc   :  { %v730_v8 = vpack.c.bf16 %v721_v5, %v720_v4 }
 0x2dd   :  { %v729_v10 = vpack.c.bf16 %v719_v7, %v718_v6 }
 0x2de   :  { %v767_v46 = vsel %vm741_vm2, %v730_v8, 0 }
 0x2df   :  { %v764_v12 = vsel %vm741_vm2, %v729_v10, 0 }
 0x2e0   :  { %998 = vmatpush3.bf16.xpose.msra.mxu1 %v764_v12 }
 0x2e1   :  { %999 = vmatprep.subr.bf16.mxu1 %v1065_v9 }
 0x2e8   :  { %1000 = vmatpush3.bf16.xpose.msra.mxu1 %v767_v46 }
 0x2ef   :  { %1002 = vmatmul.mubr.msk.bf16.vlgmr.msra.gmra.mrb[32].mxu1 %vm741_vm2, %v722_v11 }
 0x3c2   :  { %v803_v14 = vpop.f32.mrb[32].mxu1 }
 0x3c3   :  { %v804_v15 = vadd.f32 %v803_v14, %v739_v13  ;;  %v1003_v16 = vpop.f32.mrb[33].mxu1 }
 0x3c4   :  { %v806_v17 = vpop.f32.mrb[34].mxu1 }
 0x3c5   :  { %809 = vst [vmem:[#allocation3] sm:$0xff] %v804_v15  ;;  %v1004_v18 = vpop.f32.mrb[35].mxu1 }
 0x3c6   :  { %1051 = shalt.err (!%p1048_p4)
}
 0x3c7   :  { %s1052_s12 = scalar_lea.hbm %s1393_s9, 128 }
 0x3c8   :  { %p1053_p5 = scmp.ne.s32.totalorder %s1393_s9, %s1052_s12  ;;  %p1056_p6 = scmp.lt.u32.totalorder %s1052_s12, %s1393_s9 }
 0x3ca   :  { %p1058_p7 = pnand %p1056_p6, %p1053_p5 }
 0x3cc   :  { %1061 = shalt.err (!%p1058_p7)
}
 0x3cd   :  { %819 = dma.vmem_to_hbm [thread:$0]  %s817_s10, 128, %s1393_s9, [#allocation4]  }
 0x3ce   :  { %1062 = dma.done.wait [#allocation4], 128  }
 0x3cf   :  { %1063 = vsyncadd [#allocation4], 4294967168 }
 0x3d0   :  { %823 = vsyncpa [#allocation4], 1 }

</bundles_post_ra>
